<compile_context>
chip_gen: v6e
topology: v6e:2x2x1
jax: 0.10.0
libtpu: 0.0.40
codegen_flags: <defaults>
</compile_context>

<pallas_src>
import jax
import jax.numpy as jnp
from jax.experimental import pallas as pl
from jax.experimental.pallas import tpu as pltpu

LANES = 128
_MIN_GRID_STEPS = 4  # keep several blocks so v7x megacore can shard the grid


def _round_up(x, m):
    return ((x + m - 1) // m) * m


def _sublane_multiple(dtype):
    # Native packed-tile sublane count: 8 for 4-byte, 16 for 2-byte, 32 for 1-byte dtypes.
    itemsize = jnp.dtype(dtype).itemsize
    return max(8, 32 // itemsize)


def _mse_kernel(pred_ref, true_ref, out_ref):
    diff = pred_ref[...] - true_ref[...]
    out_ref[...] = diff * diff


def mse_loss_none(pred, y_true, *,
                  target_block_bytes=4 * 1024 * 1024,
                  max_cols=2048,
                  small_n_threshold=1 << 20):
    """Elementwise squared error (matches nn.MSELoss(reduction='none'))."""
    assert pred.shape == y_true.shape, "pred / y_true must have identical shapes"
    assert pred.dtype == y_true.dtype, "pred / y_true must have identical dtypes"
    orig_shape = pred.shape
    dtype = pred.dtype
    n = pred.size
    itemsize = jnp.dtype(dtype).itemsize
    sub = _sublane_multiple(dtype)

    # Small-input fallback: kernel dispatch + glue would dominate; XLA's fused
    # elementwise is already at roofline for tiny tensors.
    if n < small_n_threshold:
        return (pred - y_true) ** 2

    # ---- Choose a lane-dense 2-D slab [rows, cols]; avoid padding when possible.
    cols = 0
    max_c = min(max_cols, _round_up(n, LANES))
    for c in range(max_c, 0, -LANES):
        if n % c == 0:
            cols = c
            break

    if cols:
        # Pure reshape (contiguous, no copy): n == rows * cols exactly.
        rows = n // cols
        p2d = pred.reshape(rows, cols)
        t2d = y_true.reshape(rows, cols)
        padded = False
    else:
        # Ragged size: one pad per input, bounded by < sub*cols extra elements.
        cols = LANES * max(1, min(max_cols // LANES, pl.cdiv(n, LANES)))
        rows = _round_up(pl.cdiv(n, cols), sub)
        total = rows * cols
        p2d = jnp.pad(pred.reshape(-1), (0, total - n)).reshape(rows, cols)
        t2d = jnp.pad(y_true.reshape(-1), (0, total - n)).reshape(rows, cols)
        padded = True

    # ---- Block rows: ~target_block_bytes, sublane-aligned; cap so the grid keeps
    # >= _MIN_GRID_STEPS steps when feasible (megacore on v7x, pipelining everywhere).
    block_rows = max(sub, (target_block_bytes // (cols * itemsize)) // sub * sub)
    if rows >= _MIN_GRID_STEPS * sub:
        block_rows = min(block_rows,
                         max(sub, (rows // _MIN_GRID_STEPS) // sub * sub))
    block_rows = min(block_rows, _round_up(rows, sub))
    if rows < sub:
        block_rows = rows  # block equal to the full (tiny) row extent is legal

    grid = (pl.cdiv(rows, block_rows),)
    block_bytes = block_rows * cols * itemsize
    # 3 arrays x 2 pipeline buffers x block, plus headroom.  Must be raised
    # explicitly for v5e's 16 MiB default scoped VMEM; stays well under v7x's
    # 64 MiB physical per-TC VMEM.
    vmem_limit = int(3 * 2 * block_bytes + (4 << 20))

    out2d = pl.pallas_call(
        _mse_kernel,
        out_shape=jax.ShapeDtypeStruct((rows, cols), dtype),
        grid_spec=pltpu.PrefetchScalarGridSpec(
            num_scalar_prefetch=0,
            grid=grid,
            in_specs=[
                pl.BlockSpec((block_rows, cols), lambda i: (i, 0)),
                pl.BlockSpec((block_rows, cols), lambda i: (i, 0)),
            ],
            out_specs=pl.BlockSpec((block_rows, cols), lambda i: (i, 0)),
        ),
        compiler_params=pltpu.CompilerParams(
            dimension_semantics=("parallel",),
            vmem_limit_bytes=vmem_limit,
        ),
        cost_estimate=pl.CostEstimate(
            flops=2 * n,
            transcendentals=0,
            bytes_accessed=3 * rows * cols * itemsize,
        ),
    )(p2d, t2d)

    if padded:
        return out2d.reshape(-1)[:n].reshape(orig_shape)
    return out2d.reshape(orig_shape)


if __name__ == "__main__":
    key = jax.random.PRNGKey(0)
    kp, kt = jax.random.split(key)

    # Small shapes consistent with the module's forward (any matching pred/target).
    pred = jax.random.normal(kp, (2, 4, 16, 16), dtype=jnp.float32)
    y_true = jax.random.normal(kt, (2, 4, 16, 16), dtype=jnp.float32)
    ref = (pred - y_true) ** 2

    # Default path: tiny input takes the plain-JAX fallback.
    out = jax.block_until_ready(mse_loss_none(pred, y_true))
    assert out.shape == pred.shape and out.dtype == pred.dtype
    assert jnp.allclose(out, ref, atol=1e-6, rtol=1e-6)

    # Force the Pallas kernel path (padding-free reshape-only slab).
    out_k = jax.block_until_ready(mse_loss_none(pred, y_true, small_n_threshold=0))
    assert out_k.shape == pred.shape and out_k.dtype == pred.dtype
    assert jnp.allclose(out_k, ref, atol=1e-6, rtol=1e-6)

    # Ragged element count -> single-pad fallback inside the wrapper.
    kp2, kt2 = jax.random.split(kt)
    pred_r = jax.random.normal(kp2, (3, 5, 7), dtype=jnp.float32)
    true_r = jax.random.normal(kt2, (3, 5, 7), dtype=jnp.float32)
    out_r = jax.block_until_ready(mse_loss_none(pred_r, true_r, small_n_threshold=0))
    assert jnp.allclose(out_r, (pred_r - true_r) ** 2, atol=1e-6, rtol=1e-6)

    # Multi-block grid (exercises >= 4 grid steps / megacore-friendly tiling).
    kp3, kt3 = jax.random.split(kp2)
    pred_m = jax.random.normal(kp3, (4, 8, 64, 128), dtype=jnp.float32)
    true_m = jax.random.normal(kt3, (4, 8, 64, 128), dtype=jnp.float32)
    out_m = jax.block_until_ready(mse_loss_none(pred_m, true_m, small_n_threshold=0))
    assert jnp.allclose(out_m, (pred_m - true_m) ** 2, atol=1e-6, rtol=1e-6)

    print("KERNEL_OK")
</pallas_src>

<mosaic_0001>
module attributes {stable_mosaic.version = 11 : i64} {
  func.func @_mse_kernel(%arg0: i32, %arg1: memref<1x2048xf32, #tpu.memory_space<vmem>>, %arg2: memref<1x2048xf32, #tpu.memory_space<vmem>>, %arg3: memref<1x2048xf32, #tpu.memory_space<vmem>>) attributes {dimension_semantics = [#tpu.dimension_semantics<parallel>], iteration_bounds = array<i64: 1>, scalar_prefetch = 0 : i64, scratch_operands = 0 : i64, tpu.core_type = #tpu.core_type<tc>, window_params = [{transform_indices = @transform_0, window_bounds = array<i64: 1, 2048>}, {transform_indices = @transform_1, window_bounds = array<i64: 1, 2048>}, {transform_indices = @transform_2, window_bounds = array<i64: 1, 2048>}]} {
    %c0 = arith.constant 0 : index
    %c0_0 = arith.constant 0 : index
    %0 = vector.load %arg1[%c0, %c0_0] : memref<1x2048xf32, #tpu.memory_space<vmem>>, vector<1x2048xf32>
    %c0_1 = arith.constant 0 : index
    %c0_2 = arith.constant 0 : index
    %1 = vector.load %arg2[%c0_1, %c0_2] : memref<1x2048xf32, #tpu.memory_space<vmem>>, vector<1x2048xf32>
    %2 = arith.subf %0, %1 : vector<1x2048xf32>
    %3 = arith.mulf %2, %2 : vector<1x2048xf32>
    %c0_3 = arith.constant 0 : index
    %c0_4 = arith.constant 0 : index
    %4 = vector.load %arg3[%c0_3, %c0_4] : memref<1x2048xf32, #tpu.memory_space<vmem>>, vector<1x2048xf32>
    tpu.vector_store %arg3[%c0_3, %c0_4], %3 {strides = array<i32>} : memref<1x2048xf32, #tpu.memory_space<vmem>>, vector<1x2048xf32>,
    return
  }
  func.func @transform_0(%arg0: i32) -> (i32, i32) {
    %c0_i32 = arith.constant 0 : i32
    %c0_i32_0 = arith.constant 0 : i32
    return %arg0, %c0_i32 : i32, i32
  }
  func.func @transform_1(%arg0: i32) -> (i32, i32) {
    %c0_i32 = arith.constant 0 : i32
    %c0_i32_0 = arith.constant 0 : i32
    return %arg0, %c0_i32 : i32, i32
  }
  func.func @transform_2(%arg0: i32) -> (i32, i32) {
    %c0_i32 = arith.constant 0 : i32
    %c0_i32_0 = arith.constant 0 : i32
    return %arg0, %c0_i32 : i32, i32
  }
}

</mosaic_0001>

<bundles_post_ra>
// kernel: tpu_custom_call.1
= control target key start
LH: loop header
LB: loop body
LE: loop exit
PB: predicated region body
PF: predicated region fallthrough
CT: control target
= control target key end

     0   :  { %7 = vsyncpa [#allocation3], 0  ;;  %s158_s0 = inlined_call_operand.hbm [shape: f32[1,2048], index: 0, kind: input, shape index: {}]   ;;  %s159_s1 = inlined_call_operand.hbm [shape: f32[1,2048], index: 1, kind: input, shape index: {}]   ;;  %s160_s2 = inlined_call_operand.hbm [shape: f32[1,2048], index: 2, kind: output, shape index: {}]  }
   0x1   :  { %8 = vsyncpa [#allocation6], 0 }
   0x2   :  { %9 = vsyncpa [#allocation4], 0  ;;  %s131_s9 = smov [#allocation2]   ;;  %s132_s11 = smov [#allocation5]  }
   0x3   :  { %s16_s10 = sshll.u32 %s131_s9, 4  ;;  %s26_s12 = sshll.u32 %s132_s11, 4  ;;  %s17_s10 = int_to_ptr.vmem [resolvable:$true] %s16_s10  ;;  %s27_s12 = int_to_ptr.vmem [resolvable:$true] %s26_s12 }
   0x4   :  { %s73_s13 = scalar_lea.vmem %s17_s10, 256  ;;  %p78_p1 = scmp.lt.s32.totalorder %s17_s10, %s17_s10 }
   0x5   :  { %p74_p0 = scmp.ne.s32.totalorder %s17_s10, %s73_s13  ;;  %p79_p2 = scmp.lt.s32.totalorder %s73_s13, %s73_s13 }
   0x7   :  { %p80_p3 = por %p79_p2, %p78_p1 }
   0x9   :  { %p81_p4 = pnand %p80_p3, %p74_p0 }
   0xb   :  { %84 = shalt.err (!%p81_p4)
}
   0xc   :  { %19 = dma.hbm_to_vmem [thread:$0]  %s158_s0, 256, %s17_s10, [#allocation3]  }
   0xd   :  { %s93_s16 = scalar_lea.vmem %s27_s12, 256  ;;  %p98_p6 = scmp.lt.s32.totalorder %s27_s12, %s27_s12 }
   0xe   :  { %p94_p5 = scmp.ne.s32.totalorder %s27_s12, %s93_s16  ;;  %p99_p7 = scmp.lt.s32.totalorder %s93_s16, %s93_s16 }
  0x10   :  { %p100_p8 = por %p99_p7, %p98_p6 }
  0x12   :  { %p101_p9 = pnand %p100_p8, %p94_p5 }
  0x14   :  { %104 = shalt.err (!%p101_p9)
}
  0x15   :  { %29 = dma.hbm_to_vmem [thread:$0]  %s159_s1, 256, %s27_s12, [#allocation6]  }
  0x16   :  { %125 = dma.done.wait [#allocation3], 256  }
  0x17   :  { %126 = vsyncadd [#allocation3], 4294967040 }
  0x18   :  { %127 = dma.done.wait [#allocation6], 256  }
  0x19   :  { %128 = vsyncadd [#allocation6], 4294967040  ;;  %v36_v0 = vld [vmem:[#allocation2] sm:$0xff]  ;;  %v38_v1 = vld [vmem:[#allocation5] sm:$0xff]  ;;  %s133_s0 = smov [#allocation7]  }
  0x1a   :  { %v37_v2 = vld [vmem:[#allocation2 + $0x8] sm:$0xff]  ;;  %v40_v3 = vsub.f32 %v36_v0, %v38_v1  ;;  %v39_v4 = vld [vmem:[#allocation5 + $0x8] sm:$0xff]  ;;  %s52_s19 = sshll.u32 %s133_s0, 4  ;;  %s53_s19 = int_to_ptr.vmem [resolvable:$true] %s52_s19 }
  0x1b   :  { %v41_v5 = vsub.f32 %v37_v2, %v39_v4  ;;  %s105_s20 = scalar_lea.vmem %s53_s19, 256  ;;  %p110_p11 = scmp.lt.s32.totalorder %s53_s19, %s53_s19 }
  0x1c   :  { %v42_v6 = vmul.f32 %v40_v3, %v40_v3  ;;  %p106_p10 = scmp.ne.s32.totalorder %s53_s19, %s105_s20  ;;  %p111_p12 = scmp.lt.s32.totalorder %s105_s20, %s105_s20 }
  0x1d   :  { %v43_v7 = vmul.f32 %v41_v5, %v41_v5 }
  0x1e   :  { %44 = vst [vmem:[#allocation7] sm:$0xff] %v42_v6  ;;  %p112_p13 = por %p111_p12, %p110_p11 }
  0x1f   :  { %45 = vst [vmem:[#allocation7 + $0x8] sm:$0xff] %v43_v7 }
  0x20   :  { %p113_p0 = pnand %p112_p13, %p106_p10 }
  0x22   :  { %116 = shalt.err (!%p113_p0)
}
  0x23   :  { %55 = dma.vmem_to_hbm [thread:$0]  %s53_s19, 256, %s160_s2, [#allocation4]  }
  0x24   :  { %129 = dma.done.wait [#allocation4], 256  }
  0x25   :  { %130 = vsyncadd [#allocation4], 4294967040 }
  0x26   :  { %59 = vsyncpa [#allocation3], 1 }
  0x27   :  { %60 = vsyncpa [#allocation6], 1 }
  0x28   :  { %61 = vsyncpa [#allocation4], 1 }

</bundles_post_ra>
